<compile_context>
chip_gen: v5e
topology: v5e:2x2
jax: 0.10.0
libtpu: 0.0.40
codegen_flags: <defaults>
</compile_context>

<pallas_src>
import jax
import jax.numpy as jnp
from jax.experimental import pallas as pl
from jax.experimental.pallas import tpu as pltpu

LANES = 128
BLOCK_BYTES = 4 * 1024 * 1024      # per-buffer block target (~4 MiB)
SPLIT_BYTES = 2 * 1024 * 1024      # above this, force >= 2 grid steps (v7x megacore)
TINY_ELEMS = 1024                  # below this a kernel launch is not worth it
VMEM_LIMIT = 32 * 1024 * 1024      # safe on v5e/v6e/v7x (>= 64 MiB physical VMEM)


def _thresholded_relu_kernel(alpha_ref, x_ref, o_ref):
    x = x_ref[...]
    a = alpha_ref[0].astype(x.dtype)              # scalar from SMEM
    y = jnp.maximum(x, a)                         # clamp(x, min=alpha), NaN-preserving
    o_ref[...] = jnp.where(y == a, jnp.zeros_like(y), y)


def _elementwise_ref(x, alpha):
    """Plain-JAX fallback with identical semantics (tiny / pathological shapes)."""
    a = jnp.asarray(alpha, dtype=x.dtype)
    y = jnp.maximum(x, a)
    return jnp.where(y == a, jnp.zeros_like(y), y)


def _round_up(v, m):
    return ((v + m - 1) // m) * m


def _pick_block_rows(rows, cols, itemsize):
    """Choose the row-tile for a (rows, cols) 2-D view."""
    row_bytes = cols * itemsize
    total_bytes = rows * row_bytes
    if total_bytes <= SPLIT_BYTES:
        return rows                               # one full block, grid=(1,)
    # Force an even number (>= 2) of steps so the "parallel" axis can shard
    # across v7x's 2 TensorCores; otherwise aim for ~4 MiB per block.
    n_steps = max(2, pl.cdiv(total_bytes, BLOCK_BYTES))
    if n_steps % 2:
        n_steps += 1
    block_rows = max(1, pl.cdiv(rows, n_steps))
    aligned = _round_up(block_rows, 32)           # sublane-safe for f32/bf16/int8
    return min(rows, aligned)


def _launch(x2d, alpha_arr, block_rows, *, donate_input=False):
    rows, cols = x2d.shape
    n_elems = rows * cols
    itemsize = jnp.dtype(x2d.dtype).itemsize
    extra = {"input_output_aliases": {1: 0}} if donate_input else {}
    return pl.pallas_call(
        _thresholded_relu_kernel,
        out_shape=jax.ShapeDtypeStruct((rows, cols), x2d.dtype),
        grid_spec=pltpu.PrefetchScalarGridSpec(
            num_scalar_prefetch=0,
            grid=(pl.cdiv(rows, block_rows),),
            in_specs=[
                pl.BlockSpec(memory_space=pltpu.MemorySpace.SMEM),   # alpha scalar
                pl.BlockSpec((block_rows, cols), lambda i: (i, 0)),
            ],
            out_specs=pl.BlockSpec((block_rows, cols), lambda i: (i, 0)),
        ),
        compiler_params=pltpu.CompilerParams(
            dimension_semantics=("parallel",),
            vmem_limit_bytes=VMEM_LIMIT,
        ),
        cost_estimate=pl.CostEstimate(
            flops=3 * n_elems,
            transcendentals=0,
            bytes_accessed=2 * n_elems * itemsize,
        ),
        **extra,
    )(alpha_arr, x2d)


def thresholded_relu(x: jax.Array, alpha: float = 1.0, *, donate_input: bool = False) -> jax.Array:
    """ThresholdedRelu forward.  Set donate_input=True only if the caller no
    longer needs x (lets XLA alias the output onto the input buffer)."""
    orig_shape = x.shape
    n = x.size
    if n == 0:
        return x
    if n < TINY_ELEMS:
        return _elementwise_ref(x, alpha)

    itemsize = jnp.dtype(x.dtype).itemsize
    alpha_arr = jnp.full((1,), alpha, dtype=jnp.float32)

    if n % LANES == 0:
        # Lane-dense fast path: contiguous reshape (free) to (rows, 128).
        rows = n // LANES
        x2d = x.reshape(rows, LANES)
        block_rows = _pick_block_rows(rows, LANES, itemsize)
        out = _launch(x2d, alpha_arr, block_rows, donate_input=donate_input)
        return out.reshape(orig_shape)

    # Ragged total (n % 128 != 0): keep trailing dim intact (full-extent block
    # dim is always legal) and tile collapsed leading dims in-kernel. Stores on
    # the last dim may be lane-masked, but there are zero extra HBM passes.
    last = orig_shape[-1]
    lead = n // last
    block_rows = _pick_block_rows(lead, last, itemsize)
    if block_rows * last * itemsize > 2 * BLOCK_BYTES:
        # Pathological (enormous odd trailing dim would blow VMEM): plain JAX.
        return _elementwise_ref(x, alpha)
    x2d = x.reshape(lead, last)
    out = _launch(x2d, alpha_arr, block_rows, donate_input=donate_input)
    return out.reshape(orig_shape)


if __name__ == "__main__":
    key = jax.random.PRNGKey(0)
    alpha = 1.0

    def ref(xv, a):
        y = jnp.clip(xv, a)                       # torch.clamp(X, min=alpha)
        return jnp.where(y == jnp.asarray(a, xv.dtype), jnp.zeros_like(y), y)

    k0, k1, k2 = jax.random.split(key, 3)

    # 1) Small NCHW tensor (lane-dense fast path, single block).
    x1 = jax.random.normal(k0, (2, 4, 16, 16), dtype=jnp.float32) * 2.0
    x1 = x1.at[0, 0, 0, :4].set(1.0)              # exercise "== alpha -> 0"
    x1 = x1.at[1, 3, 2, 5].set(jnp.nan)           # NaN must propagate
    y1 = jax.block_until_ready(thresholded_relu(x1, alpha=alpha))
    assert y1.shape == x1.shape and y1.dtype == x1.dtype
    assert jnp.allclose(y1, ref(x1, alpha), equal_nan=True), "mismatch (fast path)"

    # 2) Ragged size (1155 elements, not a multiple of 128): handled entirely
    #    in-kernel, no slice/concatenate tail passes.
    x2 = jax.random.normal(k1, (3, 5, 7, 11), dtype=jnp.float32) * 2.0
    x2 = x2.at[0, 0, 0, :3].set(1.0)
    y2 = jax.block_until_ready(thresholded_relu(x2, alpha=alpha))
    assert y2.shape == x2.shape and y2.dtype == x2.dtype
    assert jnp.allclose(y2, ref(x2, alpha), equal_nan=True), "mismatch (ragged path)"

    # 3) 4 MiB tensor: exercises the even >= 2 step grid (v7x TC sharding).
    x3 = jax.random.normal(k2, (4, 256, 1024), dtype=jnp.float32)
    y3 = jax.block_until_ready(thresholded_relu(x3, alpha=alpha))
    assert y3.shape == x3.shape and y3.dtype == x3.dtype
    assert jnp.allclose(y3, ref(x3, alpha), equal_nan=True), "mismatch (multi-block path)"

    print("KERNEL_OK")
</pallas_src>

<mosaic_0001>
module attributes {stable_mosaic.version = 11 : i64} {
  func.func @_thresholded_relu_kernel(%arg0: i32, %arg1: memref<1xf32, #tpu.memory_space<smem>>, %arg2: memref<16x128xf32, #tpu.memory_space<vmem>>, %arg3: memref<16x128xf32, #tpu.memory_space<vmem>>) attributes {dimension_semantics = [#tpu.dimension_semantics<parallel>], iteration_bounds = array<i64: 1>, scalar_prefetch = 0 : i64, scratch_operands = 0 : i64, tpu.core_type = #tpu.core_type<tc>, window_params = [{transform_indices = @transform_0, window_bounds = array<i64: 1>}, {transform_indices = @transform_1, window_bounds = array<i64: 16, 128>}, {transform_indices = @transform_2, window_bounds = array<i64: 16, 128>}]} {
    %c0 = arith.constant 0 : index
    %c0_0 = arith.constant 0 : index
    %0 = vector.load %arg2[%c0, %c0_0] : memref<16x128xf32, #tpu.memory_space<vmem>>, vector<16x128xf32>
    %c0_1 = arith.constant 0 : index
    %1 = memref.load %arg1[%c0_1] : memref<1xf32, #tpu.memory_space<smem>>
    %2 = vector.broadcast %1 : f32 to vector<16x128xf32>
    %3 = arith.maximumf %0, %2 : vector<16x128xf32>
    %4 = vector.broadcast %1 : f32 to vector<16x128xf32>
    %5 = arith.cmpf oeq, %3, %4 : vector<16x128xf32>
    %cst = arith.constant 0.000000e+00 : f32
    %6 = vector.broadcast %cst : f32 to vector<16x128xf32>
    %7 = arith.select %5, %6, %3 : vector<16x128xi1>, vector<16x128xf32>
    %c0_2 = arith.constant 0 : index
    %c0_3 = arith.constant 0 : index
    %8 = vector.load %arg3[%c0_2, %c0_3] : memref<16x128xf32, #tpu.memory_space<vmem>>, vector<16x128xf32>
    tpu.vector_store %arg3[%c0_2, %c0_3], %7 {strides = array<i32>} : memref<16x128xf32, #tpu.memory_space<vmem>>, vector<16x128xf32>,
    return
  }
  func.func @transform_0(%arg0: i32) -> i32 {
    %c0_i32 = arith.constant 0 : i32
    %c0_i32_0 = arith.constant 0 : i32
    return %c0_i32 : i32
  }
  func.func @transform_1(%arg0: i32) -> (i32, i32) {
    %c0_i32 = arith.constant 0 : i32
    %c0_i32_0 = arith.constant 0 : i32
    return %arg0, %c0_i32 : i32, i32
  }
  func.func @transform_2(%arg0: i32) -> (i32, i32) {
    %c0_i32 = arith.constant 0 : i32
    %c0_i32_0 = arith.constant 0 : i32
    return %arg0, %c0_i32 : i32, i32
  }
}

</mosaic_0001>

<bundles_post_ra>
// kernel: tpu_custom_call.1
= control target key start
LH: loop header
LB: loop body
LE: loop exit
PB: predicated region body
PF: predicated region fallthrough
CT: control target
= control target key end

     0   :  { %8 = vsyncpa [#allocation4], 0  ;;  %s144_s0 = inlined_call_operand.<no memory space> [shape: f32[1], index: 0, kind: input, shape index: {}]   ;;  %s145_s1 = inlined_call_operand.hbm [shape: f32[16,128], index: 1, kind: input, shape index: {}]   ;;  %s146_s2 = inlined_call_operand.hbm [shape: f32[16,128], index: 2, kind: output, shape index: {}]  }
   0x1   :  { %9 = vsyncpa [#allocation5], 0  ;;  %s16_s11 = sshll.u32 %s145_s1, 4  ;;  %s116_s12 = smov [#allocation3]   ;;  %s17_s11 = int_to_ptr.hbm [resolvable:$true] %s16_s11 }
   0x2   :  { %s18_s13 = sshll.u32 %s116_s12, 4  ;;  %s117_s14 = smov 128   ;;  %s19_s13 = int_to_ptr.vmem [resolvable:$true] %s18_s13 }
   0x3   :  { %s118_s15 = smov 8  }
   0x4   :  { %24 = dma.hbm_to_vmem [thread:$0]  %s17_s11, 256, %s19_s13, [#allocation4], %s117_s14, %s117_s14, %s118_s15  }
   0x5   :  { %112 = dma.done.wait [#allocation4], 256  }
   0x6   :  { %113 = vsyncadd [#allocation4], 4294967040  ;;  %v32_v0 = vstv %s144_s0  ;;  %v29_v1 = vld [vmem:[#allocation3] sm:$0xff]  ;;  %v30_v2 = vld [vmem:[#allocation3 + $0x8] sm:$0xff]  ;;  %s119_s18 = smov [#allocation6]   ;;  %s47_s21 = sshll.u32 %s146_s2, 4  ;;  %s48_s21 = int_to_ptr.hbm [resolvable:$true] %s47_s21 }
   0x7   :  { %v33_v3 = vmax.f32 %v29_v1, %v32_v0  ;;  %v34_v4 = vmax.f32 %v30_v2, %v32_v0  ;;  %s45_s19 = sshll.u32 %s119_s18, 4  ;;  %s46_s19 = int_to_ptr.vmem [resolvable:$true] %s45_s19 }
   0x9   :  { %vm35_vm0 = vcmp.eq.f32.partialorder %v33_v3, %v32_v0  ;;  %vm36_vm1 = vcmp.eq.f32.partialorder %v34_v4, %v32_v0 }
   0xa   :  { %v37_v5 = vsel %vm35_vm0, 0.0, %v33_v3  ;;  %v38_v6 = vsel %vm36_vm1, 0.0, %v34_v4 }
   0xb   :  { %39 = vst [vmem:[#allocation6] sm:$0xff] %v37_v5 }
   0xc   :  { %40 = vst [vmem:[#allocation6 + $0x8] sm:$0xff] %v38_v6 }
   0xd   :  { %53 = dma.vmem_to_hbm [thread:$0]  %s46_s19, 256, %s48_s21, [#allocation5], %s117_s14, %s117_s14, %s118_s15  }
   0xe   :  { %114 = dma.done.wait [#allocation5], 256  }
   0xf   :  { %115 = vsyncadd [#allocation5], 4294967040 }
  0x10   :  { %58 = vsyncpa [#allocation4], 1 }
  0x11   :  { %59 = vsyncpa [#allocation5], 1 }

</bundles_post_ra>
